<compile_context>
chip_gen: v7x
topology: tpu7x:2x2x1
jax: 0.10.0
libtpu: 0.0.40
codegen_flags: <defaults>
</compile_context>

<pallas_src>
import functools

import jax
import jax.numpy as jnp
import numpy as np
from jax.experimental import pallas as pl
from jax.experimental.pallas import tpu as pltpu

HIGHEST = jax.lax.Precision.HIGHEST
_ROW_TILE_CAP = 2048   # 2048x64 f32 tile = 512 KiB; x2 inputs x2 buffers << scoped VMEM.


def _round_up(x, m):
    return (x + m - 1) // m * m


def _tensorcores_per_chip():
    """2 for multi-TensorCore chips (v4 / v5p / v7x), else 1. Perf-only hint."""
    try:
        kind = jax.devices()[0].device_kind.lower()
    except Exception:
        return 1
    return 2 if any(t in kind for t in ("v4", "v5p", "v7", "7x")) else 1


def _pick_row_tile(m, n_splits, cap):
    """Row tile: == m (full array, always layout-legal) or a multiple of 8, <= cap."""
    if n_splits <= 1 and m <= cap:
        return m
    target = max(-(-m // max(n_splits, 1)), 8)
    return min(_round_up(target, 8), cap)


def _relation_kernel(q_ref, s_ref, w1q_ref, w1s_ref, b1_ref, w2_ref, b2_ref,
                     w3_ref, b3_ref, o_ref):
    """One tile of M rows. All weights are tiny and VMEM-resident (constant index_map)."""
    # Layer 1: relu(q @ W1q + s @ (Wvo W1a) + b1')  -- two K=D MXU dots accumulated.
    h1 = (jnp.dot(q_ref[...], w1q_ref[...],
                  preferred_element_type=jnp.float32, precision=HIGHEST)
          + jnp.dot(s_ref[...], w1s_ref[...],
                    preferred_element_type=jnp.float32, precision=HIGHEST)
          + b1_ref[...])
    h1 = jnp.maximum(h1, 0.0)
    # Layer 2: relu(h1 @ W2^T + b2)
    h2 = jnp.dot(h1, w2_ref[...],
                 preferred_element_type=jnp.float32, precision=HIGHEST) + b2_ref[...]
    h2 = jnp.maximum(h2, 0.0)
    # Layer 3 (Linear(H/2 -> 1)): contract over H2 with the weight row on the LHS so
    # the result comes out lane-major ([1, tm]) -> lane-dense (unmasked) store.
    score_t = jax.lax.dot_general(
        w3_ref[...], h2, dimension_numbers=(((1,), (1,)), ((), ())),
        preferred_element_type=jnp.float32, precision=HIGHEST)
    score_t = score_t + b3_ref[0, 0]
    o_ref[...] = score_t.reshape(o_ref.shape).astype(o_ref.dtype)


@functools.partial(jax.jit, static_argnames=("max_rows_per_tile",))
def attention_relation_forward(query, support, params, *,
                               max_rows_per_tile=_ROW_TILE_CAP):
    """query: [B, Nq, D], support: [B, Ns, D] -> [B, Nq, Ns] (requires Nq == Ns)."""
    B, Nq, D = query.shape
    _, Ns, _ = support.shape
    assert Nq == Ns, "PyTorch module only works when n_query == n_support"

    f32 = jnp.float32
    H = params["w1"].shape[0]
    H2 = params["w2"].shape[0]

    # ---- host-side algebraic folding (tiny matrices, one-time) ------------
    # Attention with a single key: a = s @ (Wv^T Wo^T) + (bv Wo^T + bo).
    wv_t = params["wv"].astype(f32).T                                  # [D, D]
    wo_t = params["wo"].astype(f32).T                                  # [D, D]
    w_vo = jnp.dot(wv_t, wo_t, precision=HIGHEST)                      # [D, D]
    b_vo = (jnp.dot(params["bv"].astype(f32)[None, :], wo_t, precision=HIGHEST)
            + params["bo"].astype(f32)[None, :])                       # [1, D]
    # Fold the attention output into the support half of relation layer 1.
    w1 = params["w1"].astype(f32)                                      # [H, 2D]
    w1q_t = w1[:, :D].T                                                # [D, H]
    w1a_t = w1[:, D:].T                                                # [D, H]
    w1s_t = jnp.dot(w_vo, w1a_t, precision=HIGHEST)                    # [D, H]
    b1p = (jnp.dot(b_vo, w1a_t, precision=HIGHEST)
           + params["b1"].astype(f32)[None, :])                        # [1, H]
    w2_t = params["w2"].astype(f32).T                                  # [H, H2]
    b2 = params["b2"].astype(f32)[None, :]                             # [1, H2]
    w3_row = params["w3"].astype(f32)                                  # [1, H2]
    b3 = params["b3"].astype(f32).reshape(1, 1)                        # SMEM scalar

    # ---- fold batch into one row axis (metadata reshape only, no concat) --
    M = B * Nq
    q2d = query.reshape(M, D).astype(f32)
    s2d = support.reshape(M, D).astype(f32)

    n_splits = 2 if (_tensorcores_per_chip() >= 2 and M > 8) else 1
    tm = _pick_row_tile(M, n_splits, max_rows_per_tile)
    grid = pl.cdiv(M, tm)

    out = pl.pallas_call(
        _relation_kernel,
        grid=(grid,),
        in_specs=[
            pl.BlockSpec((tm, D), lambda i: (i, 0)),          # query rows
            pl.BlockSpec((tm, D), lambda i: (i, 0)),          # support rows
            pl.BlockSpec((D, H), lambda i: (0, 0)),           # W1 (query half)^T
            pl.BlockSpec((D, H), lambda i: (0, 0)),           # folded attn+W1 support half
            pl.BlockSpec((1, H), lambda i: (0, 0)),           # b1'
            pl.BlockSpec((H, H2), lambda i: (0, 0)),          # W2^T
            pl.BlockSpec((1, H2), lambda i: (0, 0)),          # b2
            pl.BlockSpec((1, H2), lambda i: (0, 0)),          # w3 row
            pl.BlockSpec(memory_space=pltpu.MemorySpace.SMEM),  # b3 scalar
        ],
        out_specs=pl.BlockSpec((1, 1, tm), lambda i: (i, 0, 0)),
        out_shape=jax.ShapeDtypeStruct((grid, 1, tm), f32),
        compiler_params=pltpu.CompilerParams(dimension_semantics=("parallel",)),
    )(q2d, s2d, w1q_t, w1s_t, b1p, w2_t, b2, w3_row, b3)

    # Flatten lane-major blocks back to row order, drop ragged-block garbage rows,
    # and broadcast (score is constant along the support axis) -- all cheap XLA ops.
    score = out.reshape(-1)[:M]
    return jnp.broadcast_to(score.reshape(B, Nq, 1), (B, Nq, Ns))


def init_params(key, feature_dim, hidden_dim):
    """Deterministic init mirroring the shapes of the PyTorch __init__."""
    D, H = feature_dim, hidden_dim
    H2 = H // 2
    ks = jax.random.split(key, 16)

    def u(k, shape, fan_in):
        bound = 1.0 / np.sqrt(fan_in)
        return jax.random.uniform(k, shape, jnp.float32, -bound, bound)

    return {
        # MultiheadAttention in_proj split into q/k/v. wq/wk/bq/bk kept for shape
        # fidelity; they cancel out of the forward math (softmax over one key).
        "wq": u(ks[0], (D, D), D), "bq": u(ks[1], (D,), D),
        "wk": u(ks[2], (D, D), D), "bk": u(ks[3], (D,), D),
        "wv": u(ks[4], (D, D), D), "bv": u(ks[5], (D,), D),
        "wo": u(ks[6], (D, D), D), "bo": u(ks[7], (D,), D),
        # relation_net: Linear(2D->H), Linear(H->H//2), Linear(H//2->1)
        "w1": u(ks[8], (H, 2 * D), 2 * D), "b1": u(ks[9], (H,), 2 * D),
        "w2": u(ks[10], (H2, H), H),       "b2": u(ks[11], (H2,), H),
        "w3": u(ks[12], (1, H2), H2),      "b3": u(ks[13], (1,), H2),
    }


def reference_forward(query, support, params):
    """Pure-JAX reference of the PyTorch forward in eval mode."""
    a = jnp.einsum("bnd,ed->bne", support, params["wv"], precision=HIGHEST) + params["bv"]
    a = jnp.einsum("bnd,ed->bne", a, params["wo"], precision=HIGHEST) + params["bo"]
    comb = jnp.concatenate([query, a], axis=-1)                         # [B, N, 2D]
    h = jax.nn.relu(jnp.einsum("bnc,hc->bnh", comb, params["w1"],
                               precision=HIGHEST) + params["b1"])
    h = jax.nn.relu(jnp.einsum("bnh,gh->bng", h, params["w2"],
                               precision=HIGHEST) + params["b2"])
    sc = jnp.einsum("bng,og->bno", h, params["w3"], precision=HIGHEST) + params["b3"]
    B, Nq, _ = query.shape
    Ns = support.shape[1]
    return jnp.broadcast_to(sc, (B, Nq, Ns))


if __name__ == "__main__":
    B = 2            # batch_size
    N = 8            # n_query == n_support (forced by the PyTorch attention call)
    D = 64           # feature_dim (divisible by num_heads=4)
    H = 32           # hidden_dim

    root = jax.random.PRNGKey(0)
    k_param, k_q, k_s, k_q2, k_s2 = jax.random.split(root, 5)
    params = init_params(k_param, D, H)

    # Case 1: default small shape, single (or 2-way on multi-TC chips) grid step.
    query = jax.random.normal(k_q, (B, N, D), jnp.float32)
    support = jax.random.normal(k_s, (B, N, D), jnp.float32)
    out = jax.block_until_ready(attention_relation_forward(query, support, params))
    ref = jax.block_until_ready(reference_forward(query, support, params))
    assert out.shape == (B, N, N), out.shape
    np.testing.assert_allclose(np.asarray(out), np.asarray(ref), rtol=1e-4, atol=1e-5)

    # Case 2: multi-step grid with a ragged last block (M = 120, tile = 64).
    B2, N2 = 3, 40
    q2 = jax.random.normal(k_q2, (B2, N2, D), jnp.float32)
    s2 = jax.random.normal(k_s2, (B2, N2, D), jnp.float32)
    out2 = jax.block_until_ready(
        attention_relation_forward(q2, s2, params, max_rows_per_tile=64))
    ref2 = jax.block_until_ready(reference_forward(q2, s2, params))
    assert out2.shape == (B2, N2, N2), out2.shape
    np.testing.assert_allclose(np.asarray(out2), np.asarray(ref2), rtol=1e-4, atol=1e-5)

    print("KERNEL_OK")
</pallas_src>

<mosaic_0001>
module attributes {stable_mosaic.version = 11 : i64} {
  func.func @_relation_kernel(%arg0: i32, %arg1: memref<16x64xf32, #tpu.memory_space<vmem>>, %arg2: memref<16x64xf32, #tpu.memory_space<vmem>>, %arg3: memref<64x32xf32, #tpu.memory_space<vmem>>, %arg4: memref<64x32xf32, #tpu.memory_space<vmem>>, %arg5: memref<1x32xf32, #tpu.memory_space<vmem>>, %arg6: memref<32x16xf32, #tpu.memory_space<vmem>>, %arg7: memref<1x16xf32, #tpu.memory_space<vmem>>, %arg8: memref<1x16xf32, #tpu.memory_space<vmem>>, %arg9: memref<1x1xf32, #tpu.memory_space<smem>>, %arg10: memref<1x1x16xf32, #tpu.memory_space<vmem>>) attributes {dimension_semantics = [#tpu.dimension_semantics<parallel>], iteration_bounds = array<i64: 1>, scalar_prefetch = 0 : i64, scratch_operands = 0 : i64, tpu.core_type = #tpu.core_type<tc>, window_params = [{transform_indices = @transform_0, window_bounds = array<i64: 16, 64>}, {transform_indices = @transform_1, window_bounds = array<i64: 16, 64>}, {pipeline_mode = #tpu.pipeline_mode<synchronous>, transform_indices = @transform_2, window_bounds = array<i64: 64, 32>}, {pipeline_mode = #tpu.pipeline_mode<synchronous>, transform_indices = @transform_3, window_bounds = array<i64: 64, 32>}, {pipeline_mode = #tpu.pipeline_mode<synchronous>, transform_indices = @transform_4, window_bounds = array<i64: 1, 32>}, {pipeline_mode = #tpu.pipeline_mode<synchronous>, transform_indices = @transform_5, window_bounds = array<i64: 32, 16>}, {pipeline_mode = #tpu.pipeline_mode<synchronous>, transform_indices = @transform_6, window_bounds = array<i64: 1, 16>}, {pipeline_mode = #tpu.pipeline_mode<synchronous>, transform_indices = @transform_7, window_bounds = array<i64: 1, 16>}, {transform_indices = @transform_8, window_bounds = array<i64: 1, 1>}, {transform_indices = @transform_9, window_bounds = array<i64: 1, 1, 16>}]} {
    %c0 = arith.constant 0 : index
    %c0_0 = arith.constant 0 : index
    %0 = vector.load %arg1[%c0, %c0_0] : memref<16x64xf32, #tpu.memory_space<vmem>>, vector<16x64xf32>
    %c0_1 = arith.constant 0 : index
    %c0_2 = arith.constant 0 : index
    %1 = vector.load %arg3[%c0_1, %c0_2] : memref<64x32xf32, #tpu.memory_space<vmem>>, vector<64x32xf32>
    %cst = arith.constant dense<0.000000e+00> : vector<16x32xf32>
    %2 = tpu.matmul %0, %1, %cst {dimension_numbers = #tpu.dot_dimension_numbers<[1], [0], [0], [1], [0, 0, 1, 1], [], []>, precision = #tpu.contract_precision<fp32>} : vector<16x64xf32>, vector<64x32xf32>, vector<16x32xf32> -> vector<16x32xf32>
    %c0_3 = arith.constant 0 : index
    %c0_4 = arith.constant 0 : index
    %3 = vector.load %arg2[%c0_3, %c0_4] : memref<16x64xf32, #tpu.memory_space<vmem>>, vector<16x64xf32>
    %c0_5 = arith.constant 0 : index
    %c0_6 = arith.constant 0 : index
    %4 = vector.load %arg4[%c0_5, %c0_6] : memref<64x32xf32, #tpu.memory_space<vmem>>, vector<64x32xf32>
    %cst_7 = arith.constant dense<0.000000e+00> : vector<16x32xf32>
    %5 = tpu.matmul %3, %4, %cst_7 {dimension_numbers = #tpu.dot_dimension_numbers<[1], [0], [0], [1], [0, 0, 1, 1], [], []>, precision = #tpu.contract_precision<fp32>} : vector<16x64xf32>, vector<64x32xf32>, vector<16x32xf32> -> vector<16x32xf32>
    %6 = arith.addf %2, %5 : vector<16x32xf32>
    %c0_8 = arith.constant 0 : index
    %c0_9 = arith.constant 0 : index
    %7 = vector.load %arg5[%c0_8, %c0_9] : memref<1x32xf32, #tpu.memory_space<vmem>>, vector<1x32xf32>
    %8 = vector.broadcast %7 : vector<1x32xf32> to vector<16x32xf32>
    %9 = arith.addf %6, %8 : vector<16x32xf32>
    %cst_10 = arith.constant 0.000000e+00 : f32
    %10 = vector.broadcast %cst_10 : f32 to vector<16x32xf32>
    %11 = arith.maximumf %9, %10 : vector<16x32xf32>
    %c0_11 = arith.constant 0 : index
    %c0_12 = arith.constant 0 : index
    %12 = vector.load %arg6[%c0_11, %c0_12] : memref<32x16xf32, #tpu.memory_space<vmem>>, vector<32x16xf32>
    %cst_13 = arith.constant dense<0.000000e+00> : vector<16x16xf32>
    %13 = tpu.matmul %11, %12, %cst_13 {dimension_numbers = #tpu.dot_dimension_numbers<[1], [0], [0], [1], [0, 0, 1, 1], [], []>, precision = #tpu.contract_precision<fp32>} : vector<16x32xf32>, vector<32x16xf32>, vector<16x16xf32> -> vector<16x16xf32>
    %c0_14 = arith.constant 0 : index
    %c0_15 = arith.constant 0 : index
    %14 = vector.load %arg7[%c0_14, %c0_15] : memref<1x16xf32, #tpu.memory_space<vmem>>, vector<1x16xf32>
    %15 = vector.broadcast %14 : vector<1x16xf32> to vector<16x16xf32>
    %16 = arith.addf %13, %15 : vector<16x16xf32>
    %cst_16 = arith.constant 0.000000e+00 : f32
    %17 = vector.broadcast %cst_16 : f32 to vector<16x16xf32>
    %18 = arith.maximumf %16, %17 : vector<16x16xf32>
    %c0_17 = arith.constant 0 : index
    %c0_18 = arith.constant 0 : index
    %19 = vector.load %arg8[%c0_17, %c0_18] : memref<1x16xf32, #tpu.memory_space<vmem>>, vector<1x16xf32>
    %cst_19 = arith.constant dense<0.000000e+00> : vector<1x16xf32>
    %20 = tpu.matmul %19, %18, %cst_19 {dimension_numbers = #tpu.dot_dimension_numbers<[1], [1], [0], [0], [0, 0, 1, 0], [], []>, precision = #tpu.contract_precision<fp32>} : vector<1x16xf32>, vector<16x16xf32>, vector<1x16xf32> -> vector<1x16xf32>
    %c0_20 = arith.constant 0 : index
    %c0_21 = arith.constant 0 : index
    %21 = memref.load %arg9[%c0_20, %c0_21] : memref<1x1xf32, #tpu.memory_space<smem>>
    %22 = vector.broadcast %21 : f32 to vector<1x16xf32>
    %23 = arith.addf %20, %22 : vector<1x16xf32>
    %24 = vector.shape_cast %23 : vector<1x16xf32> to vector<1x1x16xf32>
    %c0_22 = arith.constant 0 : index
    %c0_23 = arith.constant 0 : index
    %c0_24 = arith.constant 0 : index
    %25 = vector.load %arg10[%c0_22, %c0_23, %c0_24] : memref<1x1x16xf32, #tpu.memory_space<vmem>>, vector<1x1x16xf32>
    tpu.vector_store %arg10[%c0_22, %c0_23, %c0_24], %24 {strides = array<i32>} : memref<1x1x16xf32, #tpu.memory_space<vmem>>, vector<1x1x16xf32>,
    return
  }
  func.func @transform_0(%arg0: i32) -> (i32, i32) {
    %c0_i32 = arith.constant 0 : i32
    %c0_i32_0 = arith.constant 0 : i32
    return %arg0, %c0_i32 : i32, i32
  }
  func.func @transform_1(%arg0: i32) -> (i32, i32) {
    %c0_i32 = arith.constant 0 : i32
    %c0_i32_0 = arith.constant 0 : i32
    return %arg0, %c0_i32 : i32, i32
  }
  func.func @transform_2(%arg0: i32) -> (i32, i32) {
    %c0_i32 = arith.constant 0 : i32
    %c0_i32_0 = arith.constant 0 : i32
    %c0_i32_1 = arith.constant 0 : i32
    return %c0_i32, %c0_i32_0 : i32, i32
  }
  func.func @transform_3(%arg0: i32) -> (i32, i32) {
    %c0_i32 = arith.constant 0 : i32
    %c0_i32_0 = arith.constant 0 : i32
    %c0_i32_1 = arith.constant 0 : i32
    return %c0_i32, %c0_i32_0 : i32, i32
  }
  func.func @transform_4(%arg0: i32) -> (i32, i32) {
    %c0_i32 = arith.constant 0 : i32
    %c0_i32_0 = arith.constant 0 : i32
    %c0_i32_1 = arith.constant 0 : i32
    return %c0_i32, %c0_i32_0 : i32, i32
  }
  func.func @transform_5(%arg0: i32) -> (i32, i32) {
    %c0_i32 = arith.constant 0 : i32
    %c0_i32_0 = arith.constant 0 : i32
    %c0_i32_1 = arith.constant 0 : i32
    return %c0_i32, %c0_i32_0 : i32, i32
  }
  func.func @transform_6(%arg0: i32) -> (i32, i32) {
    %c0_i32 = arith.constant 0 : i32
    %c0_i32_0 = arith.constant 0 : i32
    %c0_i32_1 = arith.constant 0 : i32
    return %c0_i32, %c0_i32_0 : i32, i32
  }
  func.func @transform_7(%arg0: i32) -> (i32, i32) {
    %c0_i32 = arith.constant 0 : i32
    %c0_i32_0 = arith.constant 0 : i32
    %c0_i32_1 = arith.constant 0 : i32
    return %c0_i32, %c0_i32_0 : i32, i32
  }
  func.func @transform_8(%arg0: i32) -> (i32, i32) {
    %c0_i32 = arith.constant 0 : i32
    %c0_i32_0 = arith.constant 0 : i32
    %c0_i32_1 = arith.constant 0 : i32
    return %c0_i32, %c0_i32_0 : i32, i32
  }
  func.func @transform_9(%arg0: i32) -> (i32, i32, i32) {
    %c0_i32 = arith.constant 0 : i32
    %c0_i32_0 = arith.constant 0 : i32
    %c0_i32_1 = arith.constant 0 : i32
    return %arg0, %c0_i32, %c0_i32_0 : i32, i32, i32
  }
}

</mosaic_0001>

<bundles_post_ra>
// kernel: attention_relation_forward.1
= control target key start
LH: loop header
LB: loop body
LE: loop exit
PB: predicated region body
PF: predicated region fallthrough
CT: control target
= control target key end

     0   :  { %vm53_vm0 = vcmask 523264   ;;  %vm1248_vm1 = vcmask 261120   ;;  %vm3082_vm2 = vmmov 0   ;;  %vm1788_vm3 = vcmask 130048   ;;  %s3467_s3 = inlined_call_operand.vmem [shape: f32[64,32], index: 3, kind: input, shape index: {}]   ;;  %s3468_s1 = inlined_call_operand.vmem [shape: f32[16,64], index: 1, kind: input, shape index: {}]   ;;  %s3469_s0 = inlined_call_operand.vmem [shape: f32[16,64], index: 0, kind: input, shape index: {}]   ;;  %s3470_s2 = inlined_call_operand.vmem [shape: f32[64,32], index: 2, kind: input, shape index: {}]   ;;  %s3471_s5 = inlined_call_operand.vmem [shape: f32[32,16], index: 5, kind: input, shape index: {}]   ;;  %s3472_s4 = inlined_call_operand.vmem [shape: f32[1,32], index: 4, kind: input, shape index: {}]   ;;  %s3473_s7 = inlined_call_operand.vmem [shape: f32[1,16], index: 7, kind: input, shape index: {}]   ;;  %s3474_s6 = inlined_call_operand.vmem [shape: f32[1,16], index: 6, kind: input, shape index: {}]   ;;  %s3475_s8 = inlined_call_operand.<no memory space> [shape: f32[1,1], index: 8, kind: input, shape index: {}]   ;;  %s3476_s9 = inlined_call_operand.vmem [shape: f32[1,1,16], index: 9, kind: output, shape index: {}]  }
   0x1   :  { %v45_v0 = vld [vmem:[%s3467_s3] sm:$0xff]  ;;  %v46_v1 = vld [vmem:[%s3467_s3 + $0x8] sm:$0xff]  ;;  %v47_v2 = vld [vmem:[%s3467_s3 + $0x10] sm:$0xff]  ;;  %vm2257_vm4 = vcmask 122880  }
   0x2   :  { %v61_v3 = vand.u32 4294901760, %v45_v0  ;;  %v64_v4 = vand.u32 4294901760, %v46_v1  ;;  %v48_v5 = vld [vmem:[%s3467_s3 + $0x18] sm:$0xff]  ;;  %v67_v6 = vand.u32 4294901760, %v47_v2  ;;  %v49_v7 = vld [vmem:[%s3467_s3 + $0x20] sm:$0xff]  ;;  %v50_v8 = vld [vmem:[%s3467_s3 + $0x28] sm:$0xff] }
   0x3   :  { %v70_v9 = vand.u32 4294901760, %v48_v5  ;;  %v43_v10 = vld [vmem:[%s3468_s1] sm:$0xff]  ;;  %v73_v12 = vand.u32 4294901760, %v49_v7  ;;  %v76_v13 = vand.u32 4294901760, %v50_v8  ;;  %v51_v14 = vld [vmem:[%s3467_s3 + $0x30] sm:$0xff]  ;;  %v44_v15 = vld [vmem:[%s3468_s1 + $0x8] sm:$0xff] }
   0x4   :  { %v3155_v11 = vpack.c.bf16 %v64_v4, %v61_v3  ;;  %v55_v16 = vsel %vm53_vm0, %v43_v10, 0  ;;  %v52_v18 = vld [vmem:[%s3467_s3 + $0x38] sm:$0xff]  ;;  %v79_v20 = vand.u32 4294901760, %v51_v14  ;;  %v58_v22 = vsel %vm53_vm0, %v44_v15, 0  ;;  %v33_v58 = vld [vmem:[%s3469_s0] sm:$0xff] }
   0x5   :  { %v3164_v17 = vpack.c.bf16 %v70_v9, %v67_v6  ;;  %v3169_v19 = vand.u32 4294901760, %v55_v16  ;;  %v3180_v23 = vpack.c.bf16 %v76_v13, %v73_v12  ;;  %v82_v24 = vand.u32 4294901760, %v52_v18  ;;  %v35_v15 = vld [vmem:[%s3470_s2] sm:$0xff] }
   0x6   :  { %2824 = vmatprep.subr.bf16.mxu0 %v3155_v11  ;;  %2776 = vmatprep.subr.bf16.mxu1 %v3155_v11  ;;  %v3182_v25 = vsub.f32 %v45_v0, %v61_v3  ;;  %v3184_v26 = vsub.f32 %v46_v1, %v64_v4  ;;  %v3188_v28 = vand.u32 4294901760, %v58_v22  ;;  %v3191_v29 = vsub.f32 %v47_v2, %v67_v6 }
   0x7   :  { %2826 = vmatpush3.bf16.msra.mxu0 %v3155_v11  ;;  %v3175_v21 = vsub.f32 %v55_v16, %v3169_v19  ;;  %2778 = vmatpush3.bf16.msra.mxu1 %v3155_v11  ;;  %v3194_v30 = vpack.c.bf16 %v82_v24, %v79_v20  ;;  %v3198_v33 = vsub.f32 %v48_v5, %v70_v9  ;;  %v641_v3 = vsel %vm53_vm0, %v33_v58, 0  ;;  %v36_v16 = vld [vmem:[%s3470_s2 + $0x8] sm:$0xff] }
   0x8   :  { %2828 = vmatprep.subr.bf16.mxu0 %v3164_v17  ;;  %2780 = vmatprep.subr.bf16.mxu1 %v3164_v17  ;;  %v156_v31 = vand.u32 4294901760, %v3182_v25  ;;  %v163_v32 = vand.u32 4294901760, %v3184_v26  ;;  %v3203_v34 = vsub.f32 %v58_v22, %v3188_v28  ;;  %v170_v35 = vand.u32 4294901760, %v3191_v29  ;;  %v34_v22 = vld [vmem:[%s3469_s0 + $0x8] sm:$0xff] }
   0x9   :  { %v135_v27 = vand.u32 4294901760, %v3175_v21  ;;  %v177_v37 = vand.u32 4294901760, %v3198_v33  ;;  %v3209_v38 = vsub.f32 %v49_v7, %v73_v12  ;;  %v3211_v39 = vsub.f32 %v50_v8, %v76_v13 }
   0xa   :  { %v2839_v36 = vpack.c.bf16 %v163_v32, %v156_v31  ;;  %v145_v40 = vand.u32 4294901760, %v3203_v34  ;;  %v3217_v41 = vsub.f32 %v51_v14, %v79_v20  ;;  %v3221_v45 = vsub.f32 %v52_v18, %v82_v24  ;;  %v37_v24 = vld [vmem:[%s3470_s2 + $0x10] sm:$0xff] }
   0xb   :  { %2830 = vmatpush3.bf16.msra.mxu0 %v3164_v17  ;;  %2512 = vmatprep.mubr.f32.mxu0 %v135_v27  ;;  %v2843_v42 = vpack.c.bf16 %v177_v37, %v170_v35  ;;  %v184_v43 = vand.u32 4294901760, %v3209_v38  ;;  %v191_v44 = vand.u32 4294901760, %v3211_v39  ;;  %v136_v49 = vsub.f32 %v3175_v21, %v135_v27 }
   0xc   :  { %2832 = vmatprep.subr.bf16.mxu0 %v3180_v23  ;;  %2782 = vmatpush3.bf16.msra.mxu1 %v3164_v17  ;;  %v198_v47 = vand.u32 4294901760, %v3217_v41  ;;  %v205_v48 = vand.u32 4294901760, %v3221_v45  ;;  %v157_v50 = vsub.f32 %v3182_v25, %v156_v31  ;;  %v164_v51 = vsub.f32 %v3184_v26, %v163_v32 }
   0xd   :  { %2784 = vmatprep.subr.bf16.mxu1 %v3180_v23  ;;  %v2847_v46 = vpack.c.bf16 %v191_v44, %v184_v43  ;;  %v137_v52 = vand.u32 4294901760, %v136_v49  ;;  %v146_v53 = vsub.f32 %v3203_v34, %v145_v40  ;;  %v171_v57 = vsub.f32 %v3191_v29, %v170_v35 }
   0xe   :  { %v2851_v54 = vpack.c.bf16 %v205_v48, %v198_v47  ;;  %v158_v55 = vand.u32 4294901760, %v157_v50  ;;  %v165_v56 = vand.u32 4294901760, %v164_v51  ;;  %v178_v60 = vsub.f32 %v3198_v33, %v177_v37 }
   0xf   :  { %2834 = vmatpush3.bf16.msra.mxu0 %v3180_v23  ;;  %2455 = vmatprep.mubr.f32.mxu1 %v137_v52  ;;  %v147_v59 = vand.u32 4294901760, %v146_v53  ;;  %v172_v62 = vand.u32 4294901760, %v171_v57  ;;  %v185_v63 = vsub.f32 %v3209_v38, %v184_v43  ;;  %v192_v1 = vsub.f32 %v3211_v39, %v191_v44  ;;  %v41_v43 = vld [vmem:[%s3470_s2 + $0x30] sm:$0xff]  ;;  %v42_v44 = vld [vmem:[%s3470_s2 + $0x38] sm:$0xff] }
  0x10   :  { %2836 = vmatprep.subr.bf16.mxu0 %v3194_v30  ;;  %2786 = vmatpush3.bf16.msra.mxu1 %v3180_v23  ;;  %v2791_v61 = vpack.c.bf16 %v165_v56, %v158_v55  ;;  %v179_v0 = vand.u32 4294901760, %v178_v60  ;;  %v199_v2 = vsub.f32 %v3217_v41, %v198_v47  ;;  %v206_v5 = vsub.f32 %v3221_v45, %v205_v48 }
  0x11   :  { %2788 = vmatprep.subr.bf16.mxu1 %v3194_v30  ;;  %v186_v4 = vand.u32 4294901760, %v185_v63  ;;  %v193_v7 = vand.u32 4294901760, %v192_v1  ;;  %v3242_v10 = vand.u32 4294901760, %v641_v3  ;;  %v650_v20 = vand.u32 4294901760, %v36_v16 }
  0x12   :  { %v2795_v6 = vpack.c.bf16 %v179_v0, %v172_v62  ;;  %v200_v8 = vand.u32 4294901760, %v199_v2  ;;  %v207_v9 = vand.u32 4294901760, %v206_v5  ;;  %v644_v31 = vsel %vm53_vm0, %v34_v22, 0 }
  0x13   :  { %2838 = vmatpush3.bf16.msra.mxu0 %v3194_v30  ;;  %v2799_v12 = vpack.c.bf16 %v193_v7, %v186_v4  ;;  %v3249_v14 = vsub.f32 %v641_v3, %v3242_v10  ;;  %v653_v35 = vand.u32 4294901760, %v37_v24  ;;  %v3294_v37 = vand.u32 4294901760, %v644_v31 }
  0x14   :  { %2840 = vmatprep.subr.bf16.mxu0 %v2839_v36  ;;  %2790 = vmatpush3.bf16.msra.mxu1 %v3194_v30  ;;  %v2803_v13 = vpack.c.bf16 %v207_v9, %v200_v8  ;;  %v665_v49 = vand.u32 4294901760, %v41_v43  ;;  %v668_v50 = vand.u32 4294901760, %v42_v44  ;;  %v2819_v52 = vpack.c.bf16 %v3221_v45, %v3217_v41 }
  0x15   :  { %2792 = vmatprep.subr.bf16.mxu1 %v2791_v61  ;;  %v721_v18 = vand.u32 4294901760, %v3249_v14  ;;  %v3306_v47 = vsub.f32 %v37_v24, %v653_v35  ;;  %v3316_v51 = vsub.f32 %v644_v31, %v3294_v37 }
  0x16   :  { %2513 = vmatmul.mubr.f32.vlgmr.msra.gmra.mrb[0].mxu0 %v145_v40  ;;  %v2815_v40 = vpack.c.bf16 %v3211_v39, %v3209_v38  ;;  %v3336_v57 = vpack.c.bf16 %v668_v50, %v665_v49  ;;  %v3349_v1 = vsub.f32 %v41_v43, %v665_v49  ;;  %v3351_v2 = vsub.f32 %v42_v44, %v668_v50  ;;  %v1239_v43 = vld [vmem:[%s3471_s5 + $0x10] sm:$0xff] }
  0x17   :  { %2842 = vmatpush3.bf16.msra.mxu0 %v2839_v36  ;;  %2531 = vmatprep.mubr.f32.mxu0 %v3169_v19  ;;  %v731_v58 = vand.u32 4294901760, %v3316_v51  ;;  %v1262_v44 = vand.u32 4294901760, %v1239_v43 }
  0x18   :  { %2844 = vmatprep.subr.bf16.mxu0 %v2843_v42  ;;  %2456 = vmatmul.mubr.f32.vlgmr.msra.gmra.mrb[0].mxu1 %v147_v59  ;;  %v784_v9 = vand.u32 4294901760, %v3349_v1 }
  0x19   :  { %2794 = vmatpush3.bf16.msra.mxu1 %v2791_v61  ;;  %2474 = vmatprep.mubr.f32.mxu1 %v3169_v19  ;;  %v732_v3 = vsub.f32 %v3316_v51, %v731_v58 }
  0x1a   :  { %2796 = vmatprep.subr.bf16.mxu1 %v2795_v6 }
  0x1b   :  { %2846 = vmatpush3.bf16.msra.mxu0 %v2843_v42 }
  0x1c   :  { %2848 = vmatprep.subr.bf16.mxu0 %v2847_v46 }
  0x1d   :  { %2798 = vmatpush3.bf16.msra.mxu1 %v2795_v6 }
  0x1e   :  { %2800 = vmatprep.subr.bf16.mxu1 %v2799_v12 }
  0x1f   :  { %2850 = vmatpush3.bf16.msra.mxu0 %v2847_v46 }
  0x20   :  { %2852 = vmatprep.subr.bf16.mxu0 %v2851_v54 }
  0x21   :  { %2802 = vmatpush3.bf16.msra.mxu1 %v2799_v12  ;;  %v791_v12 = vand.u32 4294901760, %v3351_v2 }
  0x22   :  { %2804 = vmatprep.subr.bf16.mxu1 %v2803_v13 }
  0x23   :  { %2854 = vmatpush3.bf16.msra.mxu0 %v2851_v54  ;;  %v756_v54 = vand.u32 4294901760, %v3306_v47 }
  0x24   :  { %2856 = vmatprep.subr.bf16.mxu0 %v3155_v11 }
  0x25   :  { %2806 = vmatpush3.bf16.msra.mxu1 %v2803_v13  ;;  %v757_v60 = vsub.f32 %v3306_v47, %v756_v54  ;;  %v733_v13 = vand.u32 4294901760, %v732_v3 }
  0x26   :  { %2532 = vmatmul.mubr.f32.vlgmr.msra.gmra.mrb[0].mxu0 %v3188_v28 }
  0x27   :  { %2858 = vmatpush3.bf16.msra.mxu0 %v3155_v11  ;;  %2550 = vmatprep.mubr.f32.mxu0 %v3169_v19  ;;  %v2807_v11 = vpack.c.bf16 %v3184_v26, %v3182_v25  ;;  %v647_v19 = vand.u32 4294901760, %v35_v15  ;;  %v38_v25 = vld [vmem:[%s3470_s2 + $0x18] sm:$0xff]  ;;  %v722_v26 = vsub.f32 %v3249_v14, %v721_v18  ;;  %v758_v4 = vand.u32 4294901760, %v757_v60 }
  0x28   :  { %2860 = vmatprep.subr.bf16.mxu0 %v3164_v17  ;;  %v656_v36 = vand.u32 4294901760, %v38_v25  ;;  %2475 = vmatmul.mubr.f32.vlgmr.msra.gmra.mrb[0].mxu1 %v3188_v28 }
  0x29   :  { %2808 = vmatprep.subr.bf16.mxu1 %v2807_v11  ;;  %v3278_v27 = vsub.f32 %v35_v15, %v647_v19  ;;  %v3282_v32 = vpack.c.bf16 %v650_v20, %v647_v19  ;;  %2493 = vmatprep.mubr.f32.mxu1 %v3175_v21  ;;  %v723_v46 = vand.u32 4294901760, %v722_v26  ;;  %v785_v19 = vsub.f32 %v3349_v1, %v784_v9 }
  0x2a   :  { %2810 = vmatpush3.bf16.msra.mxu1 %v2807_v11  ;;  %v3309_v48 = vpack.c.bf16 %v656_v36, %v653_v35  ;;  %v3312_v39 = vsub.f32 %v38_v25, %v656_v36  ;;  %v2915_v35 = vpack.c.bf16 %v3351_v2, %v3349_v1 }
  0x2b   :  { %2862 = vmatpush3.bf16.msra.mxu0 %v3164_v17  ;;  %v2811_v17 = vpack.c.bf16 %v3198_v33, %v3191_v29  ;;  %v39_v29 = vld [vmem:[%s3470_s2 + $0x20] sm:$0xff]  ;;  %v3287_v33 = vsub.f32 %v36_v16, %v650_v20  ;;  %v742_v21 = vand.u32 4294901760, %v3278_v27  ;;  %v792_v20 = vsub.f32 %v3351_v2, %v791_v12 }
  0x2c   :  { %2864 = vmatprep.subr.bf16.mxu0 %v3180_v23  ;;  %v659_v42 = vand.u32 4294901760, %v39_v29  ;;  %v763_v45 = vand.u32 4294901760, %v3312_v39  ;;  %v786_v24 = vand.u32 4294901760, %v785_v19  ;;  %v2907_v26 = vpack.c.bf16 %v3312_v39, %v3306_v47 }
  0x2d   :  { %2812 = vmatprep.subr.bf16.mxu1 %v2811_v17  ;;  %v743_v53 = vsub.f32 %v3278_v27, %v742_v21  ;;  %v793_v25 = vand.u32 4294901760, %v792_v20 }
  0x2e   :  { %2814 = vmatpush3.bf16.msra.mxu1 %v2811_v17  ;;  %v3325_v55 = vsub.f32 %v39_v29, %v659_v42  ;;  %v764_v0 = vsub.f32 %v3312_v39, %v763_v45  ;;  %v2903_v17 = vpack.c.bf16 %v3287_v33, %v3278_v27  ;;  %v2947_v27 = vpack.c.bf16 %v791_v12, %v784_v9 }
  0x2f   :  { %2866 = vmatpush3.bf16.msra.mxu0 %v3180_v23  ;;  %v40_v23 = vld [vmem:[%s3470_s2 + $0x28] sm:$0xff]  ;;  %2816 = vmatprep.subr.bf16.mxu1 %v2815_v40  ;;  %v744_v59 = vand.u32 4294901760, %v743_v53  ;;  %v1360_v39 = vsub.f32 %v1239_v43, %v1262_v44 }
  0x30   :  { %2868 = vmatprep.subr.bf16.mxu0 %v3194_v30  ;;  %v662_v38 = vand.u32 4294901760, %v40_v23  ;;  %v770_v61 = vand.u32 4294901760, %v3325_v55  ;;  %v765_v8 = vand.u32 4294901760, %v764_v0  ;;  %v2263_v0 = vld [vmem:[%s3472_s4] ss:$0 sm:$0xff] }
  0x32   :  { %v3330_v56 = vpack.c.bf16 %v662_v38, %v659_v42  ;;  %2818 = vmatpush3.bf16.msra.mxu1 %v2815_v40  ;;  %v771_v5 = vsub.f32 %v3325_v55, %v770_v61  ;;  %v2891_v16 = vpack.c.bf16 %v765_v8, %v758_v4 }
  0x33   :  { %2870 = vmatpush3.bf16.msra.mxu0 %v3194_v30  ;;  %v749_v30 = vand.u32 4294901760, %v3287_v33  ;;  %2820 = vmatprep.subr.bf16.mxu1 %v2819_v52 }
  0x34   :  { %2872 = vmatprep.subr.bf16.mxu0 %v3282_v32  ;;  %v772_v15 = vand.u32 4294901760, %v771_v5 }
  0x35   :  { %v750_v41 = vsub.f32 %v3287_v33, %v749_v30  ;;  %v2935_v36 = vpack.c.bf16 %v749_v30, %v742_v21 }
  0x36   :  { %2551 = vmatmul.mubr.f32.vlgmr.msra.gmra.mrb[0].mxu0 %v3188_v28  ;;  %v3327_v28 = vsub.f32 %v40_v23, %v662_v38  ;;  %2822 = vmatpush3.bf16.msra.mxu1 %v2819_v52  ;;  %v1361_v52 = vand.u32 4294901760, %v1360_v39 }
  0x37   :  { %2874 = vmatpush3.bf16.msra.mxu0 %v3282_v32  ;;  %2569 = vmatprep.mubr.f32.mxu0 %v723_v46  ;;  %v751_v63 = vand.u32 4294901760, %v750_v41 }
  0x38   :  { %2876 = vmatprep.subr.bf16.mxu0 %v3309_v48  ;;  %v777_v62 = vand.u32 4294901760, %v3327_v28  ;;  %v2911_v31 = vpack.c.bf16 %v3327_v28, %v3325_v55  ;;  %v1362_v55 = vsub.f32 %v1360_v39, %v1361_v52 }
  0x39   :  { %v2887_v7 = vpack.c.bf16 %v751_v63, %v744_v59  ;;  %2494 = vmatmul.mubr.f32.vlgmr.msra.gmra.mrb[0].mxu1 %v3203_v34  ;;  %v2899_v34 = vpack.c.bf16 %v793_v25, %v786_v24 }
  0x3a   :  { %v778_v6 = vsub.f32 %v3327_v28, %v777_v62 }
  0x3b   :  { %2878 = vmatpush3.bf16.msra.mxu0 %v3309_v48 }
  0x3c   :  { %2880 = vmatprep.subr.bf16.mxu0 %v3330_v56  ;;  %v779_v11 = vand.u32 4294901760, %v778_v6 }
  0x3e   :  { %v2895_v22 = vpack.c.bf16 %v779_v11, %v772_v15 }
  0x3f   :  { %2882 = vmatpush3.bf16.msra.mxu0 %v3330_v56 }
  0x40   :  { %2884 = vmatprep.subr.bf16.mxu0 %v3336_v57 }
  0x43   :  { %2886 = vmatpush3.bf16.msra.mxu0 %v3336_v57 }
  0x44   :  { %2888 = vmatprep.subr.bf16.mxu0 %v2887_v7 }
  0x46   :  { %2570 = vmatmul.mubr.f32.vlgmr.msra.gmra.mrb[0].mxu0 %v733_v13 }
  0x47   :  { %2890 = vmatpush3.bf16.msra.mxu0 %v2887_v7  ;;  %2588 = vmatprep.mubr.f32.mxu0 %v3242_v10 }
  0x48   :  { %2892 = vmatprep.subr.bf16.mxu0 %v2891_v16 }
  0x4b   :  { %2894 = vmatpush3.bf16.msra.mxu0 %v2891_v16 }
  0x4c   :  { %2896 = vmatprep.subr.bf16.mxu0 %v2895_v22 }
  0x4f   :  { %2898 = vmatpush3.bf16.msra.mxu0 %v2895_v22 }
  0x50   :  { %2900 = vmatprep.subr.bf16.mxu0 %v2899_v34 }
  0x53   :  { %2902 = vmatpush3.bf16.msra.mxu0 %v2899_v34  ;;  %v3081_v34 = vmov 0.0|0.0  }
  0x54   :  { %2904 = vmatprep.subr.bf16.mxu0 %v2903_v17 }
  0x56   :  { %2589 = vmatmul.mubr.f32.vlgmr.msra.gmra.mrb[0].mxu0 %v3294_v37 }
  0x57   :  { %2906 = vmatpush3.bf16.msra.mxu0 %v2903_v17  ;;  %2607 = vmatprep.mubr.f32.mxu0 %v3249_v14  ;;  %v2939_v14 = vpack.c.bf16 %v763_v45, %v756_v54  ;;  %v3083_v17 = vmov 0.0  }
  0x58   :  { %2908 = vmatprep.subr.bf16.mxu0 %v2907_v26 }
  0x5b   :  { %2910 = vmatpush3.bf16.msra.mxu0 %v2907_v26  ;;  %v1785_v26 = vld [vmem:[%s3473_s7] sm:$0x1] }
  0x5c   :  { %2912 = vmatprep.subr.bf16.mxu0 %v2911_v31 }
  0x5f   :  { %2914 = vmatpush3.bf16.msra.mxu0 %v2911_v31  ;;  %v1790_v31 = vsel %vm1788_vm3, %v1785_v26, 0 }
  0x60   :  { %2916 = vmatprep.subr.bf16.mxu0 %v2915_v35 }
  0x63   :  { %2918 = vmatpush3.bf16.msra.mxu0 %v2915_v35  ;;  %v2264_v35 = vld [vmem:[%s3474_s6] ss:$0 sm:$0xff] }
  0x64   :  { %2920 = vmatprep.subr.bf16.mxu0 %v3282_v32 }
  0x66   :  { %2608 = vmatmul.mubr.f32.vlgmr.msra.gmra.mrb[0].mxu0 %v3316_v51 }
  0x67   :  { %2922 = vmatpush3.bf16.msra.mxu0 %v3282_v32  ;;  %2626 = vmatprep.mubr.f32.mxu0 %v721_v18  ;;  %v2943_v18 = vpack.c.bf16 %v777_v62, %v770_v61 }
  0x68   :  { %2924 = vmatprep.subr.bf16.mxu0 %v3309_v48 }
  0x6b   :  { %2926 = vmatpush3.bf16.msra.mxu0 %v3309_v48 }
  0x6c   :  { %2928 = vmatprep.subr.bf16.mxu0 %v3330_v56 }
  0x6f   :  { %2930 = vmatpush3.bf16.msra.mxu0 %v3330_v56 }
  0x70   :  { %2932 = vmatprep.subr.bf16.mxu0 %v3336_v57 }
  0x73   :  { %2934 = vmatpush3.bf16.msra.mxu0 %v3336_v57 }
  0x74   :  { %2936 = vmatprep.subr.bf16.mxu0 %v2935_v36 }
  0x76   :  { %2627 = vmatmul.mubr.f32.vlgmr.msra.gmra.mrb[0].mxu0 %v731_v58 }
  0x77   :  { %2938 = vmatpush3.bf16.msra.mxu0 %v2935_v36  ;;  %2645 = vmatprep.mubr.f32.mxu0 %v3242_v10  ;;  %v1865_v36 = vand.u32 4294901760, %v1790_v31 }
  0x78   :  { %2940 = vmatprep.subr.bf16.mxu0 %v2939_v14 }
  0x7b   :  { %2942 = vmatpush3.bf16.msra.mxu0 %v2939_v14 }
  0x7c   :  { %2944 = vmatprep.subr.bf16.mxu0 %v2943_v18 }
  0x7f   :  { %2946 = vmatpush3.bf16.msra.mxu0 %v2943_v18 }
  0x80   :  { %2948 = vmatprep.subr.bf16.mxu0 %v2947_v27 }
  0x83   :  { %2950 = vmatpush3.bf16.msra.mxu0 %v2947_v27 }
  0x84   :  { %2952 = vmatprep.subr.bf16.mxu0 %v3282_v32 }
  0x86   :  { %2646 = vmatmul.mubr.f32.vlgmr.msra.gmra.mrb[0].mxu0 %v3294_v37 }
  0x87   :  { %2954 = vmatpush3.bf16.msra.mxu0 %v3282_v32  ;;  %2664 = vmatprep.mubr.f32.mxu0 %v3242_v10  ;;  %v1237_v32 = vld [vmem:[%s3471_s5] sm:$0xff]  ;;  %v1238_v10 = vld [vmem:[%s3471_s5 + $0x8] sm:$0xff] }
  0x88   :  { %2956 = vmatprep.subr.bf16.mxu0 %v3309_v48  ;;  %v1256_v29 = vand.u32 4294901760, %v1237_v32  ;;  %v1259_v33 = vand.u32 4294901760, %v1238_v10 }
  0x8a   :  { %v3424_v23 = vpack.c.bf16 %v1259_v33, %v1256_v29  ;;  %v1346_v40 = vsub.f32 %v1237_v32, %v1256_v29  ;;  %v1353_v42 = vsub.f32 %v1238_v10, %v1259_v33  ;;  %v1866_v32 = vsub.f32 %v1790_v31, %v1865_v36 }
  0x8b   :  { %2958 = vmatpush3.bf16.msra.mxu0 %v3309_v48 }
  0x8c   :  { %2960 = vmatprep.subr.bf16.mxu0 %v3330_v56  ;;  %2968 = vmatprep.subr.bf16.mxu1 %v3424_v23  ;;  %v1347_v21 = vand.u32 4294901760, %v1346_v40  ;;  %v1354_v47 = vand.u32 4294901760, %v1353_v42  ;;  %v1867_v43 = vand.u32 4294901760, %v1866_v32 }
  0x8d   :  { %2970 = vmatpush3.bf16.msra.mxu1 %v3424_v23 }
  0x8e   :  { %v1348_v38 = vsub.f32 %v1346_v40, %v1347_v21  ;;  %v1355_v30 = vsub.f32 %v1353_v42, %v1354_v47  ;;  %v2999_v60 = vpack.c.bf16 %v1354_v47, %v1347_v21 }
  0x8f   :  { %2962 = vmatpush3.bf16.msra.mxu0 %v3330_v56  ;;  %v1363_v56 = vand.u32 4294901760, %v1362_v55  ;;  %v1787_v55 = vstv %s3475_s8 }
  0x90   :  { %2964 = vmatprep.subr.bf16.mxu0 %v3336_v57  ;;  %v1349_v50 = vand.u32 4294901760, %v1348_v38  ;;  %v1356_v51 = vand.u32 4294901760, %v1355_v30 }
  0x92   :  { %v2975_v54 = vpack.c.bf16 %v1356_v51, %v1349_v50 }
  0x93   :  { %2966 = vmatpush3.bf16.msra.mxu0 %v3336_v57  ;;  %v2983_v57 = vpack.c.bf16 %v1353_v42, %v1346_v40 }
  0x96   :  { %2665 = vmatmul.mubr.f32.vlgmr.msra.gmra.mrb[0].mxu0 %v3294_v37  ;;  %v1240_v37 = vld [vmem:[%s3471_s5 + $0x18] sm:$0xff] }
  0x97   :  { %v1265_v46 = vand.u32 4294901760, %v1240_v37 }
  0x99   :  { %v3434_v48 = vpack.c.bf16 %v1265_v46, %v1262_v44  ;;  %v1367_v49 = vsub.f32 %v1240_v37, %v1265_v46 }
  0x9b   :  { %2972 = vmatprep.subr.bf16.mxu1 %v3434_v48  ;;  %v1368_v53 = vand.u32 4294901760, %v1367_v49  ;;  %v2987_v58 = vpack.c.bf16 %v1367_v49, %v1360_v39 }
  0x9c   :  { %2974 = vmatpush3.bf16.msra.mxu1 %v3434_v48 }
  0x9d   :  { %v1369_v28 = vsub.f32 %v1367_v49, %v1368_v53  ;;  %2976 = vmatprep.subr.bf16.mxu1 %v2975_v54  ;;  %v3003_v62 = vpack.c.bf16 %v1368_v53, %v1361_v52 }
  0x9f   :  { %v1370_v41 = vand.u32 4294901760, %v1369_v28 }
  0xa1   :  { %v2979_v45 = vpack.c.bf16 %v1370_v41, %v1363_v56 }
 0x10c   :  { %v2495_v59 = vpop.f32.mrb[0].mxu1 }
 0x10d   :  { %v354_v61 = vpop.f32.mrb[1].mxu1 }
 0x169   :  { %v2666_v63 = vpop.f32.mrb[0].mxu0 }
 0x16a   :  { %v3033_v1 = vadd.f32 %v2666_v63, %v2495_v59  ;;  %v1216_v2 = vpop.f32.mrb[1].mxu0 }
 0x16b   :  { %v3034_v3 = vadd.f32 %v1216_v2, %v354_v61 }
 0x16c   :  { %v1234_v4 = vadd.f32 %v3033_v1, %v2263_v0 }
 0x16d   :  { %v1233_v5 = vadd.f32 %v3034_v3, %v2263_v0 }
 0x16e   :  { %v1236_v6 = vmax.f32 %v1234_v4, 0.0 }
 0x16f   :  { %v1235_v7 = vmax.f32 %v1233_v5, 0.0 }
 0x170   :  { %v1253_v8 = vsel %vm1248_vm1, %v1236_v6, 0 }
 0x171   :  { %v1334_v9 = vand.u32 4294901760, %v1253_v8  ;;  %v1250_v12 = vsel %vm1248_vm1, %v1235_v7, 0 }
 0x172   :  { %v1324_v13 = vand.u32 4294901760, %v1250_v12 }
 0x173   :  { %v1335_v15 = vsub.f32 %v1253_v8, %v1334_v9 }
 0x174   :  { %v1325_v16 = vsub.f32 %v1250_v12, %v1324_v13 }
 0x175   :  { %v1336_v11 = vand.u32 4294901760, %v1335_v15 }
 0x176   :  { %v1326_v19 = vand.u32 4294901760, %v1325_v16 }
 0x177   :  { %v1337_v20 = vsub.f32 %v1335_v15, %v1336_v11 }
 0x178   :  { %v1327_v22 = vsub.f32 %v1325_v16, %v1326_v19 }
 0x179   :  { %v1338_v25 = vand.u32 4294901760, %v1337_v20 }
 0x17a   :  { %v1328_v24 = vand.u32 4294901760, %v1327_v22 }
 0x17c   :  { %2675 = vmatprep.mubr.f32.mxu1 %v1328_v24 }
 0x17d   :  { %2676 = vmatmul.mubr.f32.vlgmr.msra.gmra.mrb[2].mxu1 %v1338_v25 }
 0x17e   :  { %2978 = vmatpush3.bf16.msra.mxu1 %v2975_v54  ;;  %2686 = vmatprep.mubr.f32.mxu1 %v1324_v13 }
 0x17f   :  { %2980 = vmatprep.subr.bf16.mxu1 %v2979_v45 }
 0x182   :  { %2982 = vmatpush3.bf16.msra.mxu1 %v2979_v45 }
 0x183   :  { %2984 = vmatprep.subr.bf16.mxu1 %v2983_v57 }
 0x185   :  { %2687 = vmatmul.mubr.f32.vlgmr.msra.gmra.mrb[2].mxu1 %v1334_v9 }
 0x186   :  { %2986 = vmatpush3.bf16.msra.mxu1 %v2983_v57  ;;  %2697 = vmatprep.mubr.f32.mxu1 %v1325_v16 }
 0x187   :  { %2988 = vmatprep.subr.bf16.mxu1 %v2987_v58 }
 0x18a   :  { %2990 = vmatpush3.bf16.msra.mxu1 %v2987_v58 }
 0x18b   :  { %2992 = vmatprep.subr.bf16.mxu1 %v3424_v23 }
 0x18d   :  { %2698 = vmatmul.mubr.f32.vlgmr.msra.gmra.mrb[2].mxu1 %v1335_v15 }
 0x18e   :  { %2994 = vmatpush3.bf16.msra.mxu1 %v3424_v23  ;;  %2708 = vmatprep.mubr.f32.mxu1 %v1326_v19 }
 0x18f   :  { %2996 = vmatprep.subr.bf16.mxu1 %v3434_v48 }
 0x192   :  { %2998 = vmatpush3.bf16.msra.mxu1 %v3434_v48 }
 0x193   :  { %3000 = vmatprep.subr.bf16.mxu1 %v2999_v60 }
 0x195   :  { %2709 = vmatmul.mubr.f32.vlgmr.msra.gmra.mrb[2].mxu1 %v1336_v11 }
 0x196   :  { %3002 = vmatpush3.bf16.msra.mxu1 %v2999_v60  ;;  %2719 = vmatprep.mubr.f32.mxu1 %v1324_v13 }
 0x197   :  { %3004 = vmatprep.subr.bf16.mxu1 %v3003_v62 }
 0x19a   :  { %3006 = vmatpush3.bf16.msra.mxu1 %v3003_v62 }
 0x19b   :  { %3008 = vmatprep.subr.bf16.mxu1 %v3424_v23 }
 0x19d   :  { %2720 = vmatmul.mubr.f32.vlgmr.msra.gmra.mrb[2].mxu1 %v1334_v9 }
 0x19e   :  { %3010 = vmatpush3.bf16.msra.mxu1 %v3424_v23  ;;  %2730 = vmatprep.mubr.f32.mxu1 %v1324_v13 }
 0x19f   :  { %3012 = vmatprep.subr.bf16.mxu1 %v3434_v48 }
 0x1a2   :  { %3014 = vmatpush3.bf16.msra.mxu1 %v3434_v48  ;;  %v1868_v48 = vsub.f32 %v1866_v32, %v1867_v43 }
 0x1a3   :  { %3015 = vmatprep.subr.bf16.mxu1 %v3081_v34 }
 0x1a4   :  { %v1869_v52 = vand.u32 4294901760, %v1868_v48 }
 0x1a5   :  { %2731 = vmatmul.mubr.f32.vlgmr.msra.gmra.mrb[2].mxu1 %v1334_v9 }
 0x1a6   :  { %2737 = vmatprep.mubr.msk.f32.mxu1 %vm3082_vm2, %v3083_v17 }
 0x278   :  { %v2732_v14 = vpop.f32.mrb[2].mxu1 }
 0x279   :  { %v3035_v18 = vadd.f32 %v2732_v14, %v2264_v35  ;;  %v1773_v27 = vpop.f32.mrb[3].mxu1 }
 0x27a   :  { %v3036_v10 = vadd.f32 %v2264_v35, %v1773_v27 }
 0x27b   :  { %v1784_v29 = vmax.f32 %v3035_v18, 0.0 }
 0x27c   :  { %v1783_v33 = vmax.f32 %v3036_v10, 0.0 }
 0x27d   :  { %v1796_v23 = vsel %vm1788_vm3, %v1784_v29, 0 }
 0x27e   :  { %v1802_v40 = vand.u32 4294901760, %v1796_v23  ;;  %v1793_v42 = vsel %vm1788_vm3, %v1783_v33, 0 }
 0x27f   :  { %v1799_v37 = vand.u32 4294901760, %v1793_v42 }
 0x280   :  { %v1884_v44 = vsub.f32 %v1796_v23, %v1802_v40 }
 0x281   :  { %v3016_v46 = vpack.c.bf16 %v1802_v40, %v1799_v37  ;;  %v1877_v21 = vsub.f32 %v1793_v42, %v1799_v37 }
 0x282   :  { %v1885_v47 = vand.u32 4294901760, %v1884_v44 }
 0x283   :  { %v1878_v38 = vand.u32 4294901760, %v1877_v21  ;;  %3017 = vmatpush3.bf16.xpose.msra.mxu1 %v3016_v46  ;;  %v3022_v30 = vpack.c.bf16 %v1884_v44, %v1877_v21 }
 0x284   :  { %v1886_v39 = vsub.f32 %v1884_v44, %v1885_v47  ;;  %3018 = vmatprep.subr.bf16.mxu1 %v3081_v34 }
 0x285   :  { %v1879_v49 = vsub.f32 %v1877_v21, %v1878_v38  ;;  %v3028_v50 = vpack.c.bf16 %v1885_v47, %v1878_v38 }
 0x286   :  { %v1887_v51 = vand.u32 4294901760, %v1886_v39 }
 0x287   :  { %v1880_v53 = vand.u32 4294901760, %v1879_v49 }
 0x289   :  { %v3019_v54 = vpack.c.bf16 %v1887_v51, %v1880_v53 }
 0x28a   :  { %2738 = vmatmul.mubr.f32.vlgmr.msra.gmra.mrb[4].mxu1 %v1869_v52 }
 0x28b   :  { %3020 = vmatpush3.bf16.xpose.msra.mxu1 %v3019_v54  ;;  %2744 = vmatprep.mubr.msk.f32.mxu1 %vm3082_vm2, %v3083_v17 }
 0x28c   :  { %3021 = vmatprep.subr.bf16.mxu1 %v3081_v34 }
 0x292   :  { %2745 = vmatmul.mubr.f32.vlgmr.msra.gmra.mrb[4].mxu1 %v1865_v36 }
 0x293   :  { %3023 = vmatpush3.bf16.xpose.msra.mxu1 %v3022_v30  ;;  %2751 = vmatprep.mubr.msk.f32.mxu1 %vm3082_vm2, %v3083_v17 }
 0x294   :  { %3024 = vmatprep.subr.bf16.mxu1 %v3081_v34 }
 0x29a   :  { %2752 = vmatmul.mubr.f32.vlgmr.msra.gmra.mrb[4].mxu1 %v1866_v32 }
 0x29b   :  { %3026 = vmatpush3.bf16.xpose.msra.mxu1 %v3016_v46  ;;  %2758 = vmatprep.mubr.msk.f32.mxu1 %vm3082_vm2, %v3083_v17 }
 0x29c   :  { %3027 = vmatprep.subr.bf16.mxu1 %v3081_v34 }
 0x2a2   :  { %2759 = vmatmul.mubr.f32.vlgmr.msra.gmra.mrb[4].mxu1 %v1867_v43 }
 0x2a3   :  { %3029 = vmatpush3.bf16.xpose.msra.mxu1 %v3028_v50  ;;  %2765 = vmatprep.mubr.msk.f32.mxu1 %vm3082_vm2, %v3083_v17 }
 0x2a4   :  { %3030 = vmatprep.subr.bf16.mxu1 %v3081_v34 }
 0x2aa   :  { %2766 = vmatmul.mubr.f32.vlgmr.msra.gmra.mrb[4].mxu1 %v1865_v36 }
 0x2ab   :  { %3032 = vmatpush3.bf16.xpose.msra.mxu1 %v3016_v46  ;;  %2772 = vmatprep.mubr.msk.f32.mxu1 %vm3082_vm2, %v3083_v17 }
 0x2b2   :  { %2773 = vmatmul.mubr.f32.vlgmr.msra.gmra.mrb[4].mxu1 %v1865_v36 }
 0x385   :  { %v2253_v28 = vpop.f32.mrb[4].mxu1 }
 0x386   :  { %v3037_v56 = vadd.f32 %v2253_v28, %v1787_v55  ;;  %v2774_v41 = vpop.f32.mrb[5].mxu1 }
 0x388   :  { %2258 = vst.msk [vmem:[%s3476_s9] sm:$0x1] %vm2257_vm4, %v3037_v56 }

</bundles_post_ra>
